<compile_context>
chip_gen: v7x
topology: tpu7x:2x2x1
jax: 0.10.0
libtpu: 0.0.40
codegen_flags: <defaults>
</compile_context>

<pallas_src>
import functools

import jax
import jax.numpy as jnp
from jax.experimental import pallas as pl
from jax.experimental.pallas import tpu as pltpu


def _round_up(x, m):
    return ((x + m - 1) // m) * m


def _fight_mlp_kernel(*refs, num_layers):
    """refs = (x1, x2, x3, odds1, odds2,
               w0a, w0b, w0c, w0_odds1, w0_odds2, b0,
               w1, b1, ..., w{L-1}, b{L-1},
               out)."""
    x1_ref, x2_ref, x3_ref, o1_ref, o2_ref = refs[:5]
    out_ref = refs[-1]
    params = refs[5:-1]

    w0a, w0b, w0c, w0d, w0e, b0 = params[:6]
    rest = params[6:]

    # ---- Layer 0: fused concat (split-W0 partial products), bf16 MXU, f32 acc.
    h = jnp.dot(x1_ref[...].astype(jnp.bfloat16), w0a[...],
                preferred_element_type=jnp.float32)
    h += jnp.dot(x2_ref[...].astype(jnp.bfloat16), w0b[...],
                 preferred_element_type=jnp.float32)
    h += jnp.dot(x3_ref[...].astype(jnp.bfloat16), w0c[...],
                 preferred_element_type=jnp.float32)
    # odds are single columns: rank-1 updates -> cheap VPU broadcast multiplies.
    h += o1_ref[...] * w0d[...].astype(jnp.float32)     # (TB,1) * (1,H)
    h += o2_ref[...] * w0e[...].astype(jnp.float32)
    h += b0[...]                                         # f32 bias
    if num_layers == 1:
        h = jax.nn.sigmoid(h)
    else:
        h = jnp.maximum(h, 0.0)                          # ReLU (dropout p=0 -> identity)

    # ---- Layers 1 .. L-1 (static Python unroll).
    for layer in range(1, num_layers):
        w_ref = rest[2 * (layer - 1)]
        b_ref = rest[2 * (layer - 1) + 1]
        h = jnp.dot(h.astype(jnp.bfloat16), w_ref[...],
                    preferred_element_type=jnp.float32)
        h = h + b_ref[...]                               # f32 bias, f32 VPU add
        if layer < num_layers - 1:
            h = jnp.maximum(h, 0.0)                      # ReLU
        else:
            h = jax.nn.sigmoid(h)                        # final sigmoid (EUP)
    out_ref[...] = h.astype(out_ref.dtype)


def simple_fight_net_forward(X1, X2, X3, odds1, odds2, weights, biases, *, tb=256):
    """SimpleFightNet forward.  Weights are (in, out) (transpose of torch Linear),
    semantics identical:  sigmoid(... relu(x @ W0 + b0) ... @ W_last + b_last)."""
    batch = X1.shape[0]
    d1, d2, d3 = X1.shape[1], X2.shape[1], X3.shape[1]
    num_layers = len(weights)
    out_dim = weights[-1].shape[1]

    # Batch tile: multiple of 8 sublanes, no bigger than the (padded) batch.
    # VMEM budget: 5 input tiles + 1 output tile, double-buffered, plus all
    # resident params.  At tb=256 and 64 input features this is well under
    # 1 MiB, i.e. far below the v7x 32 MiB scoped-VMEM default.
    tb = max(8, min(tb, _round_up(batch, 8)))
    nb = pl.cdiv(batch, tb)

    # Split W0 into row blocks so the concat is fused into the kernel.
    w0 = weights[0]
    w0a = w0[:d1]
    w0b = w0[d1:d1 + d2]
    w0c = w0[d1 + d2:d1 + d2 + d3]
    w0d = w0[d1 + d2 + d3:d1 + d2 + d3 + 1]
    w0e = w0[d1 + d2 + d3 + 1:]

    params = [w0a.astype(jnp.bfloat16), w0b.astype(jnp.bfloat16),
              w0c.astype(jnp.bfloat16), w0d.astype(jnp.bfloat16),
              w0e.astype(jnp.bfloat16),
              biases[0].reshape(1, -1).astype(jnp.float32)]
    for w, b in zip(weights[1:], biases[1:]):
        params.append(w.astype(jnp.bfloat16))
        params.append(b.reshape(1, -1).astype(jnp.float32))

    def x_spec(d):
        return pl.BlockSpec((tb, d), lambda i: (i, 0))

    # Params: full-array blocks, constant block index -> VMEM-resident across grid.
    param_specs = [pl.BlockSpec(p.shape, lambda i: (0, 0)) for p in params]

    # Advisory cost estimate for the XLA scheduler.
    layer_dims = [w.shape[0] for w in weights] + [out_dim]
    flops = 2 * batch * sum(a * b for a, b in zip(layer_dims[:-1], layer_dims[1:]))
    bytes_accessed = (batch * (d1 + d2 + d3 + 2) * 4            # activations in
                      + batch * out_dim * 4                     # activations out
                      + sum(int(p.size) * p.dtype.itemsize for p in params))
    cost = pl.CostEstimate(flops=flops,
                           transcendentals=batch * out_dim,     # sigmoid exp
                           bytes_accessed=bytes_accessed)

    kernel = functools.partial(_fight_mlp_kernel, num_layers=num_layers)

    # NOTE: out_dim=1 means the writeback is a masked 1/128-lane store; kept as-is
    # to preserve the module's (B, 1) output contract (tiny writeback traffic).
    return pl.pallas_call(
        kernel,
        out_shape=jax.ShapeDtypeStruct((batch, out_dim), jnp.float32),
        grid_spec=pltpu.PrefetchScalarGridSpec(
            num_scalar_prefetch=0,
            grid=(nb,),
            in_specs=[x_spec(d1), x_spec(d2), x_spec(d3), x_spec(1), x_spec(1)]
                     + param_specs,
            out_specs=pl.BlockSpec((tb, out_dim), lambda i: (i, 0)),
        ),
        compiler_params=pltpu.CompilerParams(
            dimension_semantics=("parallel",),      # megacore sharding on v7x
            vmem_limit_bytes=32 * 1024 * 1024,      # safe on v5e/v6e/v7x, >> footprint
        ),
        cost_estimate=cost,
    )(X1, X2, X3, odds1, odds2, *params)


def _init_linear_params(key, in_dim, out_dim):
    """Deterministic init mimicking torch.nn.Linear (uniform +-1/sqrt(in))."""
    kw, kb = jax.random.split(key)
    bound = 1.0 / jnp.sqrt(jnp.float32(in_dim))
    w = jax.random.uniform(kw, (in_dim, out_dim), jnp.float32, -bound, bound)
    b = jax.random.uniform(kb, (out_dim,), jnp.float32, -bound, bound)
    return w, b


if __name__ == "__main__":
    key = jax.random.PRNGKey(0)

    # Small shapes consistent with the module's forward:
    # X1: fighter-1 features, X2: fighter-2 features, X3: fight features,
    # odds1/odds2: single odds column each.
    batch = 32
    d1, d2, d3 = 24, 24, 14
    input_size = d1 + d2 + d3 + 1 + 1         # 64
    network_shape = [64, 32, 16, 1]            # small instance of the MLP
    layer_dims = [input_size] + network_shape

    k_in, k_par = jax.random.split(key)
    k1, k2, k3, k4, k5 = jax.random.split(k_in, 5)
    X1 = jax.random.normal(k1, (batch, d1), jnp.float32)
    X2 = jax.random.normal(k2, (batch, d2), jnp.float32)
    X3 = jax.random.normal(k3, (batch, d3), jnp.float32)
    odds1 = jax.random.uniform(k4, (batch, 1), jnp.float32, 1.0, 5.0)
    odds2 = jax.random.uniform(k5, (batch, 1), jnp.float32, 1.0, 5.0)

    weights, biases = [], []
    pkeys = jax.random.split(k_par, len(layer_dims) - 1)
    for pk, din, dout in zip(pkeys, layer_dims[:-1], layer_dims[1:]):
        w, b = _init_linear_params(pk, din, dout)
        weights.append(w)
        biases.append(b)

    # tb=8 -> grid=(4,): exercises the batch grid with VMEM-resident weights.
    out = simple_fight_net_forward(X1, X2, X3, odds1, odds2, weights, biases, tb=8)
    out = jax.block_until_ready(out)

    # Cross-check against a plain-JAX f32 reference of the same forward pass.
    # Kernel matmuls run bf16 on the MXU -> allow a modest tolerance vs f32.
    x_ref = jnp.concatenate([X1, X2, X3, odds1, odds2], axis=1)
    h = x_ref
    for i, (w, b) in enumerate(zip(weights, biases)):
        h = h @ w + b
        h = jnp.maximum(h, 0.0) if i < len(weights) - 1 else jax.nn.sigmoid(h)
    assert out.shape == (batch, 1)
    assert jnp.allclose(out, h, atol=2.5e-2, rtol=5e-2), (
        f"max abs diff {jnp.max(jnp.abs(out - h))}")

    print("KERNEL_OK")
</pallas_src>

<mosaic_0001>
module attributes {stable_mosaic.version = 11 : i64} {
  func.func @_fight_mlp_kernel(%arg0: i32, %arg1: memref<8x24xf32, #tpu.memory_space<vmem>>, %arg2: memref<8x24xf32, #tpu.memory_space<vmem>>, %arg3: memref<8x14xf32, #tpu.memory_space<vmem>>, %arg4: memref<8x1xf32, #tpu.memory_space<vmem>>, %arg5: memref<8x1xf32, #tpu.memory_space<vmem>>, %arg6: memref<24x64xbf16, #tpu.memory_space<vmem>>, %arg7: memref<24x64xbf16, #tpu.memory_space<vmem>>, %arg8: memref<14x64xbf16, #tpu.memory_space<vmem>>, %arg9: memref<1x64xbf16, #tpu.memory_space<vmem>>, %arg10: memref<1x64xbf16, #tpu.memory_space<vmem>>, %arg11: memref<1x64xf32, #tpu.memory_space<vmem>>, %arg12: memref<64x32xbf16, #tpu.memory_space<vmem>>, %arg13: memref<1x32xf32, #tpu.memory_space<vmem>>, %arg14: memref<32x16xbf16, #tpu.memory_space<vmem>>, %arg15: memref<1x16xf32, #tpu.memory_space<vmem>>, %arg16: memref<16x1xbf16, #tpu.memory_space<vmem>>, %arg17: memref<1x1xf32, #tpu.memory_space<vmem>>, %arg18: memref<8x1xf32, #tpu.memory_space<vmem>>) attributes {dimension_semantics = [#tpu.dimension_semantics<parallel>], iteration_bounds = array<i64: 4>, scalar_prefetch = 0 : i64, scratch_operands = 0 : i64, tpu.core_type = #tpu.core_type<tc>, window_params = [{transform_indices = @transform_0, window_bounds = array<i64: 8, 24>}, {transform_indices = @transform_1, window_bounds = array<i64: 8, 24>}, {transform_indices = @transform_2, window_bounds = array<i64: 8, 14>}, {transform_indices = @transform_3, window_bounds = array<i64: 8, 1>}, {transform_indices = @transform_4, window_bounds = array<i64: 8, 1>}, {pipeline_mode = #tpu.pipeline_mode<synchronous>, transform_indices = @transform_5, window_bounds = array<i64: 24, 64>}, {pipeline_mode = #tpu.pipeline_mode<synchronous>, transform_indices = @transform_6, window_bounds = array<i64: 24, 64>}, {pipeline_mode = #tpu.pipeline_mode<synchronous>, transform_indices = @transform_7, window_bounds = array<i64: 14, 64>}, {pipeline_mode = #tpu.pipeline_mode<synchronous>, transform_indices = @transform_8, window_bounds = array<i64: 1, 64>}, {pipeline_mode = #tpu.pipeline_mode<synchronous>, transform_indices = @transform_9, window_bounds = array<i64: 1, 64>}, {pipeline_mode = #tpu.pipeline_mode<synchronous>, transform_indices = @transform_10, window_bounds = array<i64: 1, 64>}, {pipeline_mode = #tpu.pipeline_mode<synchronous>, transform_indices = @transform_11, window_bounds = array<i64: 64, 32>}, {pipeline_mode = #tpu.pipeline_mode<synchronous>, transform_indices = @transform_12, window_bounds = array<i64: 1, 32>}, {pipeline_mode = #tpu.pipeline_mode<synchronous>, transform_indices = @transform_13, window_bounds = array<i64: 32, 16>}, {pipeline_mode = #tpu.pipeline_mode<synchronous>, transform_indices = @transform_14, window_bounds = array<i64: 1, 16>}, {pipeline_mode = #tpu.pipeline_mode<synchronous>, transform_indices = @transform_15, window_bounds = array<i64: 16, 1>}, {pipeline_mode = #tpu.pipeline_mode<synchronous>, transform_indices = @transform_16, window_bounds = array<i64: 1, 1>}, {transform_indices = @transform_17, window_bounds = array<i64: 8, 1>}]} {
    %c0 = arith.constant 0 : index
    %c0_0 = arith.constant 0 : index
    %0 = vector.load %arg1[%c0, %c0_0] : memref<8x24xf32, #tpu.memory_space<vmem>>, vector<8x24xf32>
    %1 = arith.truncf %0 : vector<8x24xf32> to vector<8x24xbf16>
    %c0_1 = arith.constant 0 : index
    %c0_2 = arith.constant 0 : index
    %2 = vector.load %arg6[%c0_1, %c0_2] : memref<24x64xbf16, #tpu.memory_space<vmem>>, vector<24x64xbf16>
    %cst = arith.constant dense<0.000000e+00> : vector<8x64xf32>
    %3 = tpu.matmul %1, %2, %cst {dimension_numbers = #tpu.dot_dimension_numbers<[1], [0], [0], [1], [0, 0, 1, 1], [], []>} : vector<8x24xbf16>, vector<24x64xbf16>, vector<8x64xf32> -> vector<8x64xf32>
    %c0_3 = arith.constant 0 : index
    %c0_4 = arith.constant 0 : index
    %4 = vector.load %arg2[%c0_3, %c0_4] : memref<8x24xf32, #tpu.memory_space<vmem>>, vector<8x24xf32>
    %5 = arith.truncf %4 : vector<8x24xf32> to vector<8x24xbf16>
    %c0_5 = arith.constant 0 : index
    %c0_6 = arith.constant 0 : index
    %6 = vector.load %arg7[%c0_5, %c0_6] : memref<24x64xbf16, #tpu.memory_space<vmem>>, vector<24x64xbf16>
    %cst_7 = arith.constant dense<0.000000e+00> : vector<8x64xf32>
    %7 = tpu.matmul %5, %6, %cst_7 {dimension_numbers = #tpu.dot_dimension_numbers<[1], [0], [0], [1], [0, 0, 1, 1], [], []>} : vector<8x24xbf16>, vector<24x64xbf16>, vector<8x64xf32> -> vector<8x64xf32>
    %8 = arith.addf %3, %7 : vector<8x64xf32>
    %c0_8 = arith.constant 0 : index
    %c0_9 = arith.constant 0 : index
    %9 = vector.load %arg3[%c0_8, %c0_9] : memref<8x14xf32, #tpu.memory_space<vmem>>, vector<8x14xf32>
    %10 = arith.truncf %9 : vector<8x14xf32> to vector<8x14xbf16>
    %c0_10 = arith.constant 0 : index
    %c0_11 = arith.constant 0 : index
    %11 = vector.load %arg8[%c0_10, %c0_11] : memref<14x64xbf16, #tpu.memory_space<vmem>>, vector<14x64xbf16>
    %cst_12 = arith.constant dense<0.000000e+00> : vector<8x64xf32>
    %12 = tpu.matmul %10, %11, %cst_12 {dimension_numbers = #tpu.dot_dimension_numbers<[1], [0], [0], [1], [0, 0, 1, 1], [], []>} : vector<8x14xbf16>, vector<14x64xbf16>, vector<8x64xf32> -> vector<8x64xf32>
    %13 = arith.addf %8, %12 : vector<8x64xf32>
    %c0_13 = arith.constant 0 : index
    %c0_14 = arith.constant 0 : index
    %14 = vector.load %arg4[%c0_13, %c0_14] : memref<8x1xf32, #tpu.memory_space<vmem>>, vector<8x1xf32>
    %c0_15 = arith.constant 0 : index
    %c0_16 = arith.constant 0 : index
    %15 = vector.load %arg9[%c0_15, %c0_16] : memref<1x64xbf16, #tpu.memory_space<vmem>>, vector<1x64xbf16>
    %16 = arith.extf %15 : vector<1x64xbf16> to vector<1x64xf32>
    %17 = vector.broadcast %14 : vector<8x1xf32> to vector<8x64xf32>
    %18 = vector.broadcast %16 : vector<1x64xf32> to vector<8x64xf32>
    %19 = arith.mulf %17, %18 : vector<8x64xf32>
    %20 = arith.addf %13, %19 : vector<8x64xf32>
    %c0_17 = arith.constant 0 : index
    %c0_18 = arith.constant 0 : index
    %21 = vector.load %arg5[%c0_17, %c0_18] : memref<8x1xf32, #tpu.memory_space<vmem>>, vector<8x1xf32>
    %c0_19 = arith.constant 0 : index
    %c0_20 = arith.constant 0 : index
    %22 = vector.load %arg10[%c0_19, %c0_20] : memref<1x64xbf16, #tpu.memory_space<vmem>>, vector<1x64xbf16>
    %23 = arith.extf %22 : vector<1x64xbf16> to vector<1x64xf32>
    %24 = vector.broadcast %21 : vector<8x1xf32> to vector<8x64xf32>
    %25 = vector.broadcast %23 : vector<1x64xf32> to vector<8x64xf32>
    %26 = arith.mulf %24, %25 : vector<8x64xf32>
    %27 = arith.addf %20, %26 : vector<8x64xf32>
    %c0_21 = arith.constant 0 : index
    %c0_22 = arith.constant 0 : index
    %28 = vector.load %arg11[%c0_21, %c0_22] : memref<1x64xf32, #tpu.memory_space<vmem>>, vector<1x64xf32>
    %29 = vector.broadcast %28 : vector<1x64xf32> to vector<8x64xf32>
    %30 = arith.addf %27, %29 : vector<8x64xf32>
    %cst_23 = arith.constant 0.000000e+00 : f32
    %31 = vector.broadcast %cst_23 : f32 to vector<8x64xf32>
    %32 = arith.maximumf %30, %31 : vector<8x64xf32>
    %33 = arith.truncf %32 : vector<8x64xf32> to vector<8x64xbf16>
    %c0_24 = arith.constant 0 : index
    %c0_25 = arith.constant 0 : index
    %34 = vector.load %arg12[%c0_24, %c0_25] : memref<64x32xbf16, #tpu.memory_space<vmem>>, vector<64x32xbf16>
    %cst_26 = arith.constant dense<0.000000e+00> : vector<8x32xf32>
    %35 = tpu.matmul %33, %34, %cst_26 {dimension_numbers = #tpu.dot_dimension_numbers<[1], [0], [0], [1], [0, 0, 1, 1], [], []>} : vector<8x64xbf16>, vector<64x32xbf16>, vector<8x32xf32> -> vector<8x32xf32>
    %c0_27 = arith.constant 0 : index
    %c0_28 = arith.constant 0 : index
    %36 = vector.load %arg13[%c0_27, %c0_28] : memref<1x32xf32, #tpu.memory_space<vmem>>, vector<1x32xf32>
    %37 = vector.broadcast %36 : vector<1x32xf32> to vector<8x32xf32>
    %38 = arith.addf %35, %37 : vector<8x32xf32>
    %cst_29 = arith.constant 0.000000e+00 : f32
    %39 = vector.broadcast %cst_29 : f32 to vector<8x32xf32>
    %40 = arith.maximumf %38, %39 : vector<8x32xf32>
    %41 = arith.truncf %40 : vector<8x32xf32> to vector<8x32xbf16>
    %c0_30 = arith.constant 0 : index
    %c0_31 = arith.constant 0 : index
    %42 = vector.load %arg14[%c0_30, %c0_31] : memref<32x16xbf16, #tpu.memory_space<vmem>>, vector<32x16xbf16>
    %cst_32 = arith.constant dense<0.000000e+00> : vector<8x16xf32>
    %43 = tpu.matmul %41, %42, %cst_32 {dimension_numbers = #tpu.dot_dimension_numbers<[1], [0], [0], [1], [0, 0, 1, 1], [], []>} : vector<8x32xbf16>, vector<32x16xbf16>, vector<8x16xf32> -> vector<8x16xf32>
    %c0_33 = arith.constant 0 : index
    %c0_34 = arith.constant 0 : index
    %44 = vector.load %arg15[%c0_33, %c0_34] : memref<1x16xf32, #tpu.memory_space<vmem>>, vector<1x16xf32>
    %45 = vector.broadcast %44 : vector<1x16xf32> to vector<8x16xf32>
    %46 = arith.addf %43, %45 : vector<8x16xf32>
    %cst_35 = arith.constant 0.000000e+00 : f32
    %47 = vector.broadcast %cst_35 : f32 to vector<8x16xf32>
    %48 = arith.maximumf %46, %47 : vector<8x16xf32>
    %49 = arith.truncf %48 : vector<8x16xf32> to vector<8x16xbf16>
    %c0_36 = arith.constant 0 : index
    %c0_37 = arith.constant 0 : index
    %50 = vector.load %arg16[%c0_36, %c0_37] : memref<16x1xbf16, #tpu.memory_space<vmem>>, vector<16x1xbf16>
    %cst_38 = arith.constant dense<0.000000e+00> : vector<8x1xf32>
    %51 = tpu.matmul %49, %50, %cst_38 {dimension_numbers = #tpu.dot_dimension_numbers<[1], [0], [0], [1], [0, 0, 1, 1], [], []>} : vector<8x16xbf16>, vector<16x1xbf16>, vector<8x1xf32> -> vector<8x1xf32>
    %c0_39 = arith.constant 0 : index
    %c0_40 = arith.constant 0 : index
    %52 = vector.load %arg17[%c0_39, %c0_40] : memref<1x1xf32, #tpu.memory_space<vmem>>, vector<1x1xf32>
    %53 = vector.broadcast %52 : vector<1x1xf32> to vector<8x1xf32>
    %54 = arith.addf %51, %53 : vector<8x1xf32>
    %55 = arith.negf %54 : vector<8x1xf32>
    %56 = math.exp %55 : vector<8x1xf32>
    %cst_41 = arith.constant 1.000000e+00 : f32
    %57 = vector.broadcast %cst_41 : f32 to vector<8x1xf32>
    %58 = arith.addf %57, %56 : vector<8x1xf32>
    %59 = arith.divf %57, %58 : vector<8x1xf32>
    %c0_42 = arith.constant 0 : index
    %c0_43 = arith.constant 0 : index
    %60 = vector.load %arg18[%c0_42, %c0_43] : memref<8x1xf32, #tpu.memory_space<vmem>>, vector<8x1xf32>
    tpu.vector_store %arg18[%c0_42, %c0_43], %59 {strides = array<i32>} : memref<8x1xf32, #tpu.memory_space<vmem>>, vector<8x1xf32>,
    return
  }
  func.func @transform_0(%arg0: i32) -> (i32, i32) {
    %c0_i32 = arith.constant 0 : i32
    %c0_i32_0 = arith.constant 0 : i32
    return %arg0, %c0_i32 : i32, i32
  }
  func.func @transform_1(%arg0: i32) -> (i32, i32) {
    %c0_i32 = arith.constant 0 : i32
    %c0_i32_0 = arith.constant 0 : i32
    return %arg0, %c0_i32 : i32, i32
  }
  func.func @transform_2(%arg0: i32) -> (i32, i32) {
    %c0_i32 = arith.constant 0 : i32
    %c0_i32_0 = arith.constant 0 : i32
    return %arg0, %c0_i32 : i32, i32
  }
  func.func @transform_3(%arg0: i32) -> (i32, i32) {
    %c0_i32 = arith.constant 0 : i32
    %c0_i32_0 = arith.constant 0 : i32
    return %arg0, %c0_i32 : i32, i32
  }
  func.func @transform_4(%arg0: i32) -> (i32, i32) {
    %c0_i32 = arith.constant 0 : i32
    %c0_i32_0 = arith.constant 0 : i32
    return %arg0, %c0_i32 : i32, i32
  }
  func.func @transform_5(%arg0: i32) -> (i32, i32) {
    %c0_i32 = arith.constant 0 : i32
    %c0_i32_0 = arith.constant 0 : i32
    %c0_i32_1 = arith.constant 0 : i32
    return %c0_i32, %c0_i32_0 : i32, i32
  }
  func.func @transform_6(%arg0: i32) -> (i32, i32) {
    %c0_i32 = arith.constant 0 : i32
    %c0_i32_0 = arith.constant 0 : i32
    %c0_i32_1 = arith.constant 0 : i32
    return %c0_i32, %c0_i32_0 : i32, i32
  }
  func.func @transform_7(%arg0: i32) -> (i32, i32) {
    %c0_i32 = arith.constant 0 : i32
    %c0_i32_0 = arith.constant 0 : i32
    %c0_i32_1 = arith.constant 0 : i32
    return %c0_i32, %c0_i32_0 : i32, i32
  }
  func.func @transform_8(%arg0: i32) -> (i32, i32) {
    %c0_i32 = arith.constant 0 : i32
    %c0_i32_0 = arith.constant 0 : i32
    %c0_i32_1 = arith.constant 0 : i32
    return %c0_i32, %c0_i32_0 : i32, i32
  }
  func.func @transform_9(%arg0: i32) -> (i32, i32) {
    %c0_i32 = arith.constant 0 : i32
    %c0_i32_0 = arith.constant 0 : i32
    %c0_i32_1 = arith.constant 0 : i32
    return %c0_i32, %c0_i32_0 : i32, i32
  }
  func.func @transform_10(%arg0: i32) -> (i32, i32) {
    %c0_i32 = arith.constant 0 : i32
    %c0_i32_0 = arith.constant 0 : i32
    %c0_i32_1 = arith.constant 0 : i32
    return %c0_i32, %c0_i32_0 : i32, i32
  }
  func.func @transform_11(%arg0: i32) -> (i32, i32) {
    %c0_i32 = arith.constant 0 : i32
    %c0_i32_0 = arith.constant 0 : i32
    %c0_i32_1 = arith.constant 0 : i32
    return %c0_i32, %c0_i32_0 : i32, i32
  }
  func.func @transform_12(%arg0: i32) -> (i32, i32) {
    %c0_i32 = arith.constant 0 : i32
    %c0_i32_0 = arith.constant 0 : i32
    %c0_i32_1 = arith.constant 0 : i32
    return %c0_i32, %c0_i32_0 : i32, i32
  }
  func.func @transform_13(%arg0: i32) -> (i32, i32) {
    %c0_i32 = arith.constant 0 : i32
    %c0_i32_0 = arith.constant 0 : i32
    %c0_i32_1 = arith.constant 0 : i32
    return %c0_i32, %c0_i32_0 : i32, i32
  }
  func.func @transform_14(%arg0: i32) -> (i32, i32) {
    %c0_i32 = arith.constant 0 : i32
    %c0_i32_0 = arith.constant 0 : i32
    %c0_i32_1 = arith.constant 0 : i32
    return %c0_i32, %c0_i32_0 : i32, i32
  }
  func.func @transform_15(%arg0: i32) -> (i32, i32) {
    %c0_i32 = arith.constant 0 : i32
    %c0_i32_0 = arith.constant 0 : i32
    %c0_i32_1 = arith.constant 0 : i32
    return %c0_i32, %c0_i32_0 : i32, i32
  }
  func.func @transform_16(%arg0: i32) -> (i32, i32) {
    %c0_i32 = arith.constant 0 : i32
    %c0_i32_0 = arith.constant 0 : i32
    %c0_i32_1 = arith.constant 0 : i32
    return %c0_i32, %c0_i32_0 : i32, i32
  }
  func.func @transform_17(%arg0: i32) -> (i32, i32) {
    %c0_i32 = arith.constant 0 : i32
    %c0_i32_0 = arith.constant 0 : i32
    return %arg0, %c0_i32 : i32, i32
  }
}

</mosaic_0001>

<bundles_post_ra>
// kernel: tpu_custom_call.1
= control target key start
LH: loop header
LB: loop body
LE: loop exit
PB: predicated region body
PF: predicated region fallthrough
CT: control target
= control target key end

     0   :  { %s1389_s26 = smov 0   ;;  %s1501_s0 = inlined_call_operand.vmem [shape: f32[32,24], index: 0, kind: input, shape index: {}]   ;;  %s1502_s1 = inlined_call_operand.vmem [shape: f32[32,24], index: 1, kind: input, shape index: {}]   ;;  %s1503_s2 = inlined_call_operand.vmem [shape: f32[32,14], index: 2, kind: input, shape index: {}]   ;;  %s1504_s3 = inlined_call_operand.vmem [shape: f32[32,1], index: 3, kind: input, shape index: {}]   ;;  %s1505_s4 = inlined_call_operand.vmem [shape: f32[32,1], index: 4, kind: input, shape index: {}]   ;;  %s1506_s5 = inlined_call_operand.vmem [shape: bf16[24,64], index: 5, kind: input, shape index: {}]   ;;  %s1507_s6 = inlined_call_operand.vmem [shape: bf16[24,64], index: 6, kind: input, shape index: {}]   ;;  %s1508_s7 = inlined_call_operand.vmem [shape: bf16[14,64], index: 7, kind: input, shape index: {}]   ;;  %s1509_s8 = inlined_call_operand.vmem [shape: bf16[1,64], index: 8, kind: input, shape index: {}]   ;;  %s1510_s9 = inlined_call_operand.vmem [shape: bf16[1,64], index: 9, kind: input, shape index: {}]   ;;  %s1511_s10 = inlined_call_operand.vmem [shape: f32[1,64], index: 10, kind: input, shape index: {}]   ;;  %s1512_s11 = inlined_call_operand.vmem [shape: bf16[64,32], index: 11, kind: input, shape index: {}]   ;;  %s1513_s12 = inlined_call_operand.vmem [shape: f32[1,32], index: 12, kind: input, shape index: {}]   ;;  %s1514_s13 = inlined_call_operand.vmem [shape: bf16[32,16], index: 13, kind: input, shape index: {}]   ;;  %s1515_s14 = inlined_call_operand.vmem [shape: f32[1,16], index: 14, kind: input, shape index: {}]   ;;  %s1516_s15 = inlined_call_operand.vmem [shape: bf16[16,1], index: 15, kind: input, shape index: {}]   ;;  %s1517_s16 = inlined_call_operand.<no memory space> [shape: f32[1,1], index: 16, kind: input, shape index: {}]   ;;  %s1518_s17 = inlined_call_operand.vmem [shape: f32[32,1], index: 17, kind: output, shape index: {}]  }
   0x1   :  { %1519 = sst [smem:[#allocation3_spill]] %s1501_s0  ;;  %v22_v0 = vstv %s1517_s16 }
   0x2   :  { %1520 = sst [smem:[#allocation4_spill]] %s1502_s1  ;;  %23 = vst [vmem:[#allocation2] sm:$0x1] %v22_v0 }
   0x3 LB: > { %s1155_s27 = sadd.s32 4294967295, %s1291_s26   ;;  %p1159_p0 = scmp.ge.s32.totalorder %s1291_s26, 1  ;;  %s1291_s26 = sphi %s1389_s26, %s29_s26  }
   0x4   : > { %p524_p1 = scmp.lt.s32.totalorder %s1291_s26, 5 }
   0x6   : > { %p525_p2 = pnand %p1159_p0, %p524_p1 }
   0x7   : > { %v1269_v1 = vld [vmem:[%s1507_s6] sm:$0xff] (!%p525_p2)   ;;  %v1293_v2 = vmov (!%p525_p2), 0.0   ;;  %vm638_vm0 = vcmask (!%p525_p2), 1043456   ;;  %v1271_v4 = vld [vmem:[%s1507_s6 + $0x8] ss:$0 sps:$4 sm:$0xff] (!%p525_p2)   ;;  %p590_p3 = scmp.lt.s32.totalorder (!%p525_p2), %s1155_s27, 3  ;;  %v803_v23 = vlaneseq (!%p525_p2) }
   0x8   : > { %528 = sbr.rel (%p525_p2) target bundleno = 930 (0x3a2), region = 88  ;;  %1209 = vmatprep.subr.bf16.mxu0 (!%p525_p2), %v1293_v2  ;;  %1217 = vmatprep.subr.bf16.mxu1 (!%p525_p2), %v1293_v2  ;;  %v1270_v3 = vld [vmem:[%s1506_s5] sm:$0xff] (!%p525_p2)   ;;  %v1272_v5 = vld [vmem:[%s1506_s5 + $0x8] ss:$0 sps:$4 sm:$0xff] (!%p525_p2)   ;;  %v640_v6 = vsel (!%p525_p2), %vm638_vm0, %v1271_v4, 0  ;;  %vm1294_vm1 = vmmov (!%p525_p2), 0  }
   0x9   : > { %1210 = vmatpush3.bf16.msra.mxu0 (!%p525_p2), %v1269_v1  ;;  %1218 = vmatpush3.bf16.msra.mxu1 (!%p525_p2), %v1270_v3  ;;  %v695_v7 = vsel (!%p525_p2), %vm638_vm0, %v1272_v5, 0  ;;  %v1273_v8 = vld [vmem:[%s1508_s7] sm:$0x7f] (!%p525_p2)   ;;  %v1295_v9 = vmov (!%p525_p2), 0   ;;  %vm750_vm2 = vcmask (!%p525_p2), 1046528   ;;  %s1521_s25 = sld [smem:[#allocation4_spill]] (!%p525_p2) }
   0xa   : > { %1211 = vmatprep.subr.bf16.mxu0 (!%p525_p2), %v1293_v2  ;;  %1219 = vmatprep.subr.bf16.mxu1 (!%p525_p2), %v1293_v2  ;;  %vm634_vm3 = vcmask (!%p525_p2), 195584   ;;  %v752_v13 = vsel (!%p525_p2), %vm750_vm2, %v1273_v8, 0  ;;  %vm746_vm4 = vcmask (!%p525_p2), 113664   ;;  %v1274_v19 = vld [vmem:[%s1512_s11] sm:$0xff] (!%p525_p2)   ;;  %v1275_v20 = vld [vmem:[%s1512_s11 + $0x8] sm:$0xff] (!%p525_p2)   ;;  %v1276_v21 = vld [vmem:[%s1512_s11 + $0x10] sm:$0xff] (!%p525_p2)  }
   0xb   : > { %1213 = vmatprep.mubr.msk.bf16.mxu0 (!%p525_p2), %vm1294_vm1, %v1293_v2  ;;  %1221 = vmatprep.mubr.msk.bf16.mxu1 (!%p525_p2), %vm1294_vm1, %v1293_v2  ;;  %v1277_v22 = vld [vmem:[%s1512_s11 + $0x18] sm:$0xff] (!%p525_p2)   ;;  %v804_v24 = vshrl.u32 (!%p525_p2), %v803_v23, 7  ;;  %v796_v25 = vld [vmem:[%s1509_s8] sm:$0x1] (!%p525_p2)  ;;  %vm872_vm5 = vcmask (!%p525_p2), 523264   ;;  %v1279_v57 = vld [vmem:[%s1514_s13 + $0x8] sm:$0xff] (!%p525_p2)  }
   0xc   : > { %1268 = vset.pattern.permute.xlu0 (!%p525_p2), %v1295_v9  ;;  %v810_v28 = vld [vmem:[%s1510_s9] sm:$0x1] (!%p525_p2)  ;;  %v797_v31 = vunpack.c.l.bf16 (!%p525_p2), %v796_v25  ;;  %vm941_vm6 = vcmask (!%p525_p2), 261120   ;;  %vm1002_vm7 = vcmask (!%p525_p2), 130048   ;;  %vm1052_vm8 = vcmask (!%p525_p2), 7168  }
   0xd   : > { %1212 = vmatpush3.bf16.msra.mxu0 (!%p525_p2), %v640_v6  ;;  %1220 = vmatpush3.bf16.msra.mxu1 (!%p525_p2), %v695_v7  ;;  %v805_v32 = vsub.s32 (!%p525_p2), 0, %v804_v24  ;;  %v811_v38 = vunpack.c.l.bf16 (!%p525_p2), %v810_v28  ;;  %v1174_v51 = vld [vmem:[%s1511_s10] ss:$0 sm:$0xff] (!%p525_p2) }
   0xe   : > { %1225 = vmatprep.subr.bf16.mxu0 (!%p525_p2), %v1293_v2  ;;  %1231 = vmatprep.subr.bf16.mxu1 (!%p525_p2), %v1293_v2  ;;  %v1278_v56 = vld [vmem:[%s1514_s13] sm:$0xff] (!%p525_p2)  }
   0xf   : > { %s1524_s27 = smov (!%p590_p3, %s1155_s27), 3  ;;  %v806_v40 = vrot.slane %v797_v31, %v805_v32  ;;  %v820_v41 = vrot.slane %v811_v38, %v805_v32  ;;  %v1175_v58 = vld [vmem:[%s1513_s12] ss:$0 sm:$0xff] }
  0x10   : > { %s1420_s22 = sshll.u32 %s1524_s27, 3  ;;  %s1522_s27 = sld [smem:[#allocation3_spill]]  ;;  %v1280_v3 = vld [vmem:[%s1516_s15] sm:$0xff]  }
  0x11   : > { %s597_s28 = scalar_lea.vmem %s1521_s25, %s1420_s22  ;;  %s601_s19 = scalar_lea.vmem %s1503_s2, %s1420_s22  ;;  %v1181_v4 = vld [vmem:[%s1515_s14] ss:$0 sm:$0xff] }
  0x12   : > { %v620_v10 = vld [vmem:[%s597_s28] sm:$0xff]  ;;  %s605_s21 = scalar_lea.vmem %s1504_s3, %s1420_s22  ;;  %s609_s25 = scalar_lea.vmem %s1505_s4, %s1420_s22 }
  0x13   : > { %v621_v11 = vpack.c.bf16 %v620_v10, %v620_v10  ;;  %v795_v15 = vld [vmem:[%s605_s21] sm:$0xff]  ;;  %s613_s24 = scalar_lea.vmem %s1518_s17, %s1420_s22 }
  0x14   : > { %800 = vperm.xlu0 %1268, %v795_v15   ;;  %v737_v16 = vld [vmem:[%s601_s19] sm:$0xff] }
  0x15   : > { %1214 = vmatmul.mubr.msk.bf16.vlgmr.msra.gmra.mrb[0].mxu0 %vm634_vm3, %v621_v11  ;;  %v809_v17 = vld [vmem:[%s609_s25] sm:$0xff]  ;;  %v738_v18 = vpack.c.bf16 %v737_v16, %v737_v16 }
  0x16   : > { %s593_s0 = scalar_lea.vmem %s1522_s27, %s1420_s22  ;;  %1226 = vmatpush3.bf16.msra.mxu0 %v752_v13  ;;  %1227 = vmatprep.mubr.msk.bf16.mxu0 %vm1294_vm1, %v1293_v2 }
  0x17   : > { %v615_v12 = vld [vmem:[%s593_s0] sm:$0xff]  ;;  %1243 = vmatprep.subr.bf16.mxu0 %v1293_v2 }
  0x18   : > { %v616_v14 = vpack.c.bf16 %v615_v12, %v615_v12  ;;  %814 = vperm.xlu0 %1268, %v809_v17  }
  0x1a   : > { %1222 = vmatmul.mubr.msk.bf16.vlgmr.msra.gmra.mrb[0].mxu1 %vm634_vm3, %v616_v14 }
  0x1b   : > { %1239 = vmatprep.mubr.msk.bf16.mxu1 %vm1294_vm1, %v1293_v2  ;;  %1232 = vmatpush3.bf16.msra.mxu1 %v1274_v19 }
  0x1c   : > { %1233 = vmatprep.subr.bf16.mxu1 %v1293_v2 }
  0x1d   : > { %1228 = vmatmul.mubr.msk.bf16.vlgmr.msra.gmra.mrb[4].mxu0 %vm746_vm4, %v738_v18 }
  0x1e   : > { %1247 = vmatprep.mubr.msk.bf16.mxu0 %vm1294_vm1, %v1293_v2  ;;  %1244 = vmatpush3.bf16.msra.mxu0 %v1278_v56 }
  0x1f   : > { %1234 = vmatpush3.bf16.msra.mxu1 %v1275_v20  ;;  %1245 = vmatprep.subr.bf16.mxu0 %v1293_v2 }
  0x20   : > { %1235 = vmatprep.subr.bf16.mxu1 %v1293_v2 }
  0x22   : > { %1246 = vmatpush3.bf16.msra.mxu0 %v1279_v57 }
  0x23   : > { %1236 = vmatpush3.bf16.msra.mxu1 %v1276_v21  ;;  %1251 = vmatprep.subr.bf16.mxu0 %v1293_v2 }
  0x24   : > { %1237 = vmatprep.subr.bf16.mxu1 %v1293_v2 }
  0x27   : > { %1238 = vmatpush3.bf16.msra.mxu1 %v1277_v22 }
  0x93   : > { %v801_v27 = vpop.permute.xlu0 %800 }
  0x94   : > { %v807_v44 = vmul.f32 %v806_v40, %v801_v27 }
  0x97   : > { %v815_v42 = vpop.permute.xlu0 %814 }
  0x98   : > { %v821_v48 = vmul.f32 %v820_v41, %v815_v42 }
  0xe8   : > { %v676_v26 = vpop.f32.mrb[0].mxu0 }
  0xe9   : > { %v1215_v29 = vpop.f32.mrb[1].mxu0 }
  0xea   : > { %v679_v34 = vpop.f32.mrb[2].mxu0 }
  0xeb   : > { %v1216_v36 = vpop.f32.mrb[3].mxu0 }
  0xed   : > { %v731_v30 = vpop.f32.mrb[0].mxu1 }
  0xee   : > { %v732_v33 = vadd.f32 %v731_v30, %v676_v26  ;;  %v1223_v35 = vpop.f32.mrb[1].mxu1 }
  0xef   : > { %v734_v37 = vpop.f32.mrb[2].mxu1 }
  0xf0   : > { %v1224_v39 = vpop.f32.mrb[3].mxu1  ;;  %v788_v43 = vpop.f32.mrb[4].mxu0 }
  0xf1   : > { %v794_v45 = vadd.f32 %v788_v43, %v732_v33  ;;  %v1229_v46 = vpop.f32.mrb[5].mxu0 }
  0xf2   : > { %v791_v47 = vpop.f32.mrb[6].mxu0 }
  0xf3   : > { %v808_v49 = vadd.f32 %v807_v44, %v794_v45  ;;  %v1230_v50 = vpop.f32.mrb[7].mxu0 }
  0xf5   : > { %v822_v52 = vadd.f32 %v821_v48, %v808_v49 }
  0xf7   : > { %v830_v53 = vadd.f32 %v1174_v51, %v822_v52 }
  0xf9   : > { %v831_v54 = vmax.f32 %v830_v53, 0.0 }
  0xfb   : > { %v832_v55 = vpack.c.bf16 %v831_v54, %v831_v54 }
  0xfd   : > { %1240 = vmatmul.mubr.msk.bf16.vlgmr.msra.gmra.mrb[4].mxu1 %vm872_vm5, %v832_v55 }
 0x1d0   : > { %v910_v59 = vpop.f32.mrb[4].mxu1 }
 0x1d1   : > { %v911_v60 = vadd.f32 %v1175_v58, %v910_v59  ;;  %v1241_v61 = vpop.f32.mrb[5].mxu1 }
 0x1d2   : > { %v913_v62 = vpop.f32.mrb[6].mxu1 }
 0x1d3   : > { %v916_v63 = vmax.f32 %v911_v60, 0.0  ;;  %v1242_v0 = vpop.f32.mrb[7].mxu1 }
 0x1d5   : > { %v917_v1 = vpack.c.bf16 %v916_v63, %v916_v63 }
 0x1d7   : > { %1248 = vmatmul.mubr.msk.bf16.vlgmr.msra.gmra.mrb[8].mxu0 %vm941_vm6, %v917_v1 }
 0x1d8   : > { %1253 = vmatprep.mubr.msk.bf16.mxu0 %vm1294_vm1, %v1293_v2  ;;  %1252 = vmatpush3.bf16.msra.mxu0 %v1280_v3  ;;  %v1185_v2 = vld [vmem:[#allocation2] ss:$0 sm:$0xff] }
 0x2aa   : > { %v979_v5 = vpop.f32.mrb[8].mxu0 }
 0x2ab   : > { %v980_v6 = vadd.f32 %v1181_v4, %v979_v5  ;;  %v1249_v7 = vpop.f32.mrb[9].mxu0 }
 0x2ac   : > { %v982_v8 = vpop.f32.mrb[10].mxu0 }
 0x2ad   : > { %v985_v9 = vmax.f32 %v980_v6, 0.0  ;;  %v1250_v10 = vpop.f32.mrb[11].mxu0 }
 0x2af   : > { %v986_v11 = vpack.c.bf16 %v985_v9, %v985_v9 }
 0x2b1   : > { %1254 = vmatmul.mubr.msk.bf16.vlgmr.msra.gmra.mrb[12].mxu0 %vm1002_vm7, %v986_v11 }
 0x384   : > { %v1040_v12 = vpop.f32.mrb[12].mxu0 }
 0x385   : > { %v1041_v13 = vadd.f32 %v1185_v2, %v1040_v12  ;;  %v1255_v14 = vpop.f32.mrb[13].mxu0 }
 0x386   : > { %v1043_v15 = vpop.f32.mrb[14].mxu0 }
 0x387   : > { %v1188_v16 = vmul.f32 -1.442695, %v1041_v13  ;;  %v1256_v17 = vpop.f32.mrb[15].mxu0 }
 0x389   : > { %1281 = vpow2.f32 %v1188_v16 }
 0x393   : > { %v1282_v18 = vpop.eup %1281 }
 0x394   : > { %v1049_v19 = vadd.f32 1.0, %v1282_v18 }
 0x396   : > { %1283 = vrcp.f32 %v1049_v19 }
 0x3a0   : > { %v1284_v20 = vpop.eup %1283 }
 0x3a1   : > { %1053 = vst.msk [vmem:[%s613_s24] sm:$0xff] %vm1052_vm8, %v1284_v20 }
 0x3a2 PF: > { %s29_s26 = sadd.s32 1, %s1291_s26  }
 0x3a3   : > { %p26_p4 = scmp.ge.s32.totalorder %s29_s26, 6  }
 0x3a5   :  { %28 = sbr.rel (!%p26_p4) target bundleno = 3 (0x3), region = 130 }

</bundles_post_ra>
